<compile_context>
chip_gen: v7x
topology: tpu7x:2x2x1
jax: 0.10.0
libtpu: 0.0.40
codegen_flags: <defaults>
</compile_context>

<pallas_src>
import jax
import jax.numpy as jnp
from jax import lax
from jax.experimental import pallas as pl
from jax.experimental.pallas import tpu as pltpu

LN_EPS = 1e-5


def _decoder_embeddings_kernel(ids_ref, word_hbm, pos_ref, gamma_ref, beta_ref,
                               out_ref, staging, sems):
    # ids_ref  : (B, S) int32, SMEM (scalar prefetch)
    # word_hbm : (V, H) f32, HBM (pl.ANY) -- gathered row-by-row via DMA
    # pos_ref  : (TS, H) f32 VMEM
    # gamma_ref/beta_ref : (1, H) f32 VMEM
    # out_ref  : (1, TS, H) f32 VMEM
    # staging  : (TS, H) f32 VMEM scratch
    # sems     : (TS,) DMA semaphores
    b = pl.program_id(0)
    j = pl.program_id(1)
    TS, H = staging.shape
    V = word_hbm.shape[0]
    row0 = j * TS

    # Issue all row-gather DMAs for this tile; they overlap with each other.
    def _issue(t, carry):
        tok = jnp.clip(ids_ref[b, row0 + t], 0, V - 1)   # guard OOB ids
        pltpu.make_async_copy(word_hbm.at[pl.ds(tok, 1), :],
                              staging.at[pl.ds(t, 1), :],
                              sems.at[t]).start()
        return carry

    lax.fori_loop(0, TS, _issue, 0)

    def _wait(t, carry):
        pltpu.make_async_copy(word_hbm.at[pl.ds(0, 1), :],
                              staging.at[pl.ds(t, 1), :],
                              sems.at[t]).wait()
        return carry

    lax.fori_loop(0, TS, _wait, 0)

    # Fused position-add + LayerNorm over the hidden dim (all f32).
    emb = staging[...] + pos_ref[...]                          # (TS, H)
    mean = jnp.mean(emb, axis=-1, keepdims=True)               # (TS, 1)
    centered = emb - mean
    var = jnp.mean(centered * centered, axis=-1, keepdims=True)
    inv = lax.rsqrt(var + LN_EPS)                              # EUP slot
    out = centered * inv * gamma_ref[...] + beta_ref[...]      # broadcast (1,H)

    # dropout: identity at inference.
    out_ref[...] = out[None, :, :].astype(out_ref.dtype)


def decoder_embeddings(x, word_emb, pos_emb, gamma, beta, *, seq_tile=None):
    """x: (B, S) int32 token ids -> (B, S, H) float32."""
    B, S = x.shape
    V, H = word_emb.shape
    if S > pos_emb.shape[0]:
        raise ValueError("sequence length exceeds max_position_embeddings")
    if seq_tile is None:
        seq_tile = S if S <= 256 else 256
    if S % seq_tile != 0:
        # TODO(synk): pad the ragged tail tile instead of requiring divisibility.
        raise ValueError("S must be divisible by seq_tile")
    n_tiles = S // seq_tile

    pos_slice = pos_emb[:S]            # position_ids = arange(S) for every batch row
    gamma2d = gamma.reshape(1, H)
    beta2d = beta.reshape(1, H)

    return pl.pallas_call(
        _decoder_embeddings_kernel,
        out_shape=jax.ShapeDtypeStruct((B, S, H), jnp.float32),
        grid_spec=pltpu.PrefetchScalarGridSpec(
            num_scalar_prefetch=1,                     # ids -> SMEM scalars
            grid=(B, n_tiles),
            in_specs=[
                pl.BlockSpec(memory_space=pl.ANY),                      # word table stays in HBM
                pl.BlockSpec((seq_tile, H), lambda b, j, ids: (j, 0)),  # position embeddings tile
                pl.BlockSpec((1, H), lambda b, j, ids: (0, 0)),         # LN gamma
                pl.BlockSpec((1, H), lambda b, j, ids: (0, 0)),         # LN beta
            ],
            out_specs=pl.BlockSpec((1, seq_tile, H),
                                   lambda b, j, ids: (b, j, 0)),
            scratch_shapes=[
                pltpu.VMEM((seq_tile, H), jnp.float32),     # gathered-row staging
                pltpu.SemaphoreType.DMA((seq_tile,)),       # one sem per row DMA
            ],
        ),
        compiler_params=pltpu.CompilerParams(
            dimension_semantics=("parallel", "parallel")),
    )(x.astype(jnp.int32), word_emb, pos_slice, gamma2d, beta2d)


def _reference(x, word_emb, pos_emb, gamma, beta):
    B, S = x.shape
    emb = word_emb[x] + pos_emb[:S][None, :, :]
    mean = jnp.mean(emb, axis=-1, keepdims=True)
    var = jnp.mean((emb - mean) ** 2, axis=-1, keepdims=True)
    return (emb - mean) / jnp.sqrt(var + LN_EPS) * gamma + beta


if __name__ == "__main__":
    # Module hyper-params (small, consistent with the forward pass).
    vocab_size = 32
    hidden_dim = 32
    pad_token_id = 0
    max_position_embeddings = 16
    batch, seq = 2, 8

    key = jax.random.PRNGKey(0)
    k_word, k_pos, k_ids = jax.random.split(key, 3)

    # Deterministic parameter init (mirrors nn.Embedding ~ N(0,1); padding row zeroed).
    word_emb = jax.random.normal(k_word, (vocab_size, hidden_dim), jnp.float32)
    word_emb = word_emb.at[pad_token_id].set(0.0)
    pos_emb = jax.random.normal(k_pos, (max_position_embeddings, hidden_dim),
                                jnp.float32)
    gamma = jnp.ones((hidden_dim,), jnp.float32)   # nn.LayerNorm default init
    beta = jnp.zeros((hidden_dim,), jnp.float32)

    # Example token ids (include the pad token).
    x = jax.random.randint(k_ids, (batch, seq), 0, vocab_size, dtype=jnp.int32)
    x = x.at[0, 0].set(pad_token_id)

    out = decoder_embeddings(x, word_emb, pos_emb, gamma, beta)
    out = jax.block_until_ready(out)

    ref = _reference(x, word_emb, pos_emb, gamma, beta)
    assert out.shape == (batch, seq, hidden_dim)
    assert jnp.allclose(out, ref, atol=1e-5, rtol=1e-5), "mismatch vs reference"

    print("KERNEL_OK")
</pallas_src>

<mosaic_0001>
module attributes {stable_mosaic.version = 11 : i64} {
  func.func @_decoder_embeddings_kernel(%arg0: i32, %arg1: i32, %arg2: memref<2x8xi32, #tpu.memory_space<smem>>, %arg3: memref<32x32xf32, #tpu.memory_space<any>>, %arg4: memref<8x32xf32, #tpu.memory_space<vmem>>, %arg5: memref<1x32xf32, #tpu.memory_space<vmem>>, %arg6: memref<1x32xf32, #tpu.memory_space<vmem>>, %arg7: memref<1x8x32xf32, #tpu.memory_space<vmem>>, %arg8: memref<8x32xf32, #tpu.memory_space<vmem>>, %arg9: memref<8x!tpu.dma_semaphore, #tpu.memory_space<semaphore_mem>>) attributes {dimension_semantics = [#tpu.dimension_semantics<parallel>, #tpu.dimension_semantics<parallel>], iteration_bounds = array<i64: 2, 1>, scalar_prefetch = 1 : i64, scratch_operands = 2 : i64, tpu.core_type = #tpu.core_type<tc>, window_params = [{}, {transform_indices = @transform_1, window_bounds = array<i64: 8, 32>}, {pipeline_mode = #tpu.pipeline_mode<synchronous>, transform_indices = @transform_2, window_bounds = array<i64: 1, 32>}, {pipeline_mode = #tpu.pipeline_mode<synchronous>, transform_indices = @transform_3, window_bounds = array<i64: 1, 32>}, {transform_indices = @transform_4, window_bounds = array<i64: 1, 8, 32>}]} {
    %c8_i32 = arith.constant 8 : i32
    %0 = arith.muli %arg1, %c8_i32 : i32
    %c0_i32 = arith.constant 0 : i32
    %c8_i32_0 = arith.constant 8 : i32
    %1 = arith.addi %c0_i32, %c8_i32_0 : i32
    %c1_i32 = arith.constant 1 : i32
    scf.for %arg10 = %c0_i32 to %1 step %c1_i32  : i32 {
      %30 = arith.addi %0, %arg10 : i32
      %31 = arith.index_cast %arg0 : i32 to index
      %32 = arith.index_cast %30 : i32 to index
      %33 = memref.load %arg2[%31, %32] : memref<2x8xi32, #tpu.memory_space<smem>>
      %c0_i32_20 = arith.constant 0 : i32
      %c31_i32 = arith.constant 31 : i32
      %34 = arith.maxsi %c0_i32_20, %33 : i32
      %35 = arith.minsi %c31_i32, %34 : i32
      %c0_i32_21 = arith.constant 0 : i32
      %36 = tpu.memref_slice %arg3[%35, %c0_i32_21] : memref<32x32xf32, #tpu.memory_space<any>> -> memref<1x32xf32, #tpu.memory_space<any>>
      %c0_i32_22 = arith.constant 0 : i32
      %37 = tpu.memref_slice %arg8[%arg10, %c0_i32_22] : memref<8x32xf32, #tpu.memory_space<vmem>> -> memref<1x32xf32, #tpu.memory_space<vmem>>
      %38 = tpu.memref_slice %arg9[%arg10] : memref<8x!tpu.dma_semaphore, #tpu.memory_space<semaphore_mem>> -> memref<1x!tpu.dma_semaphore, #tpu.memory_space<semaphore_mem>>
      %39 = tpu.memref_squeeze %38 : memref<1x!tpu.dma_semaphore, #tpu.memory_space<semaphore_mem>> -> memref<!tpu.dma_semaphore, #tpu.memory_space<semaphore_mem>>
      tpu.enqueue_dma source(%36 : memref<1x32xf32, #tpu.memory_space<any>>) target(%37 : memref<1x32xf32, #tpu.memory_space<vmem>>) target_semaphore(%39 : memref<!tpu.dma_semaphore, #tpu.memory_space<semaphore_mem>>)
    }
    %c8_i32_1 = arith.constant 8 : i32
    %c0_i32_2 = arith.constant 0 : i32
    %c8_i32_3 = arith.constant 8 : i32
    %2 = arith.addi %c0_i32_2, %c8_i32_3 : i32
    %c1_i32_4 = arith.constant 1 : i32
    scf.for %arg10 = %c0_i32_2 to %2 step %c1_i32_4  : i32 {
      %c0_i32_20 = arith.constant 0 : i32
      %c0_i32_21 = arith.constant 0 : i32
      %30 = tpu.memref_slice %arg3[%c0_i32_20, %c0_i32_21] : memref<32x32xf32, #tpu.memory_space<any>> -> memref<1x32xf32, #tpu.memory_space<any>>
      %c0_i32_22 = arith.constant 0 : i32
      %31 = tpu.memref_slice %arg8[%arg10, %c0_i32_22] : memref<8x32xf32, #tpu.memory_space<vmem>> -> memref<1x32xf32, #tpu.memory_space<vmem>>
      %32 = tpu.memref_slice %arg9[%arg10] : memref<8x!tpu.dma_semaphore, #tpu.memory_space<semaphore_mem>> -> memref<1x!tpu.dma_semaphore, #tpu.memory_space<semaphore_mem>>
      %33 = tpu.memref_squeeze %32 : memref<1x!tpu.dma_semaphore, #tpu.memory_space<semaphore_mem>> -> memref<!tpu.dma_semaphore, #tpu.memory_space<semaphore_mem>>
      tpu.wait_dma2 semaphore(%33 : memref<!tpu.dma_semaphore, #tpu.memory_space<semaphore_mem>>) src(%30 : memref<1x32xf32, #tpu.memory_space<any>>) dst(%31 : memref<1x32xf32, #tpu.memory_space<vmem>>)
    }
    %c8_i32_5 = arith.constant 8 : i32
    %c0 = arith.constant 0 : index
    %c0_6 = arith.constant 0 : index
    %3 = vector.load %arg8[%c0, %c0_6] : memref<8x32xf32, #tpu.memory_space<vmem>>, vector<8x32xf32>
    %c0_7 = arith.constant 0 : index
    %c0_8 = arith.constant 0 : index
    %4 = vector.load %arg4[%c0_7, %c0_8] : memref<8x32xf32, #tpu.memory_space<vmem>>, vector<8x32xf32>
    %5 = arith.addf %3, %4 : vector<8x32xf32>
    %cst = arith.constant dense<0.000000e+00> : vector<8xf32>
    %6 = vector.multi_reduction <add>, %5, %cst [1] : vector<8x32xf32> to vector<8xf32>
    %7 = vector.shape_cast %6 : vector<8xf32> to vector<8x1xf32>
    %cst_9 = arith.constant 3.200000e+01 : f32
    %8 = vector.broadcast %cst_9 : f32 to vector<8x1xf32>
    %9 = arith.divf %7, %8 : vector<8x1xf32>
    %10 = vector.broadcast %9 : vector<8x1xf32> to vector<8x32xf32>
    %11 = arith.subf %5, %10 : vector<8x32xf32>
    %12 = arith.mulf %11, %11 : vector<8x32xf32>
    %cst_10 = arith.constant dense<0.000000e+00> : vector<8xf32>
    %13 = vector.multi_reduction <add>, %12, %cst_10 [1] : vector<8x32xf32> to vector<8xf32>
    %14 = vector.shape_cast %13 : vector<8xf32> to vector<8x1xf32>
    %cst_11 = arith.constant 3.200000e+01 : f32
    %15 = vector.broadcast %cst_11 : f32 to vector<8x1xf32>
    %16 = arith.divf %14, %15 : vector<8x1xf32>
    %cst_12 = arith.constant 9.99999974E-6 : f32
    %17 = vector.broadcast %cst_12 : f32 to vector<8x1xf32>
    %18 = arith.addf %16, %17 : vector<8x1xf32>
    %19 = math.rsqrt %18 : vector<8x1xf32>
    %20 = vector.broadcast %19 : vector<8x1xf32> to vector<8x32xf32>
    %21 = arith.mulf %11, %20 : vector<8x32xf32>
    %c0_13 = arith.constant 0 : index
    %c0_14 = arith.constant 0 : index
    %22 = vector.load %arg5[%c0_13, %c0_14] : memref<1x32xf32, #tpu.memory_space<vmem>>, vector<1x32xf32>
    %23 = vector.broadcast %22 : vector<1x32xf32> to vector<8x32xf32>
    %24 = arith.mulf %21, %23 : vector<8x32xf32>
    %c0_15 = arith.constant 0 : index
    %c0_16 = arith.constant 0 : index
    %25 = vector.load %arg6[%c0_15, %c0_16] : memref<1x32xf32, #tpu.memory_space<vmem>>, vector<1x32xf32>
    %26 = vector.broadcast %25 : vector<1x32xf32> to vector<8x32xf32>
    %27 = arith.addf %24, %26 : vector<8x32xf32>
    %28 = vector.shape_cast %27 : vector<8x32xf32> to vector<1x8x32xf32>
    %c0_17 = arith.constant 0 : index
    %c0_18 = arith.constant 0 : index
    %c0_19 = arith.constant 0 : index
    %29 = vector.load %arg7[%c0_17, %c0_18, %c0_19] : memref<1x8x32xf32, #tpu.memory_space<vmem>>, vector<1x8x32xf32>
    tpu.vector_store %arg7[%c0_17, %c0_18, %c0_19], %28 {strides = array<i32>} : memref<1x8x32xf32, #tpu.memory_space<vmem>>, vector<1x8x32xf32>,
    return
  }
  func.func @transform_1(%arg0: i32, %arg1: i32, %arg2: memref<2x8xi32, #tpu.memory_space<smem>>) -> (i32, i32) {
    %c0_i32 = arith.constant 0 : i32
    %c0_i32_0 = arith.constant 0 : i32
    return %arg1, %c0_i32 : i32, i32
  }
  func.func @transform_2(%arg0: i32, %arg1: i32, %arg2: memref<2x8xi32, #tpu.memory_space<smem>>) -> (i32, i32) {
    %c0_i32 = arith.constant 0 : i32
    %c0_i32_0 = arith.constant 0 : i32
    %c0_i32_1 = arith.constant 0 : i32
    return %c0_i32, %c0_i32_0 : i32, i32
  }
  func.func @transform_3(%arg0: i32, %arg1: i32, %arg2: memref<2x8xi32, #tpu.memory_space<smem>>) -> (i32, i32) {
    %c0_i32 = arith.constant 0 : i32
    %c0_i32_0 = arith.constant 0 : i32
    %c0_i32_1 = arith.constant 0 : i32
    return %c0_i32, %c0_i32_0 : i32, i32
  }
  func.func @transform_4(%arg0: i32, %arg1: i32, %arg2: memref<2x8xi32, #tpu.memory_space<smem>>) -> (i32, i32, i32) {
    %c0_i32 = arith.constant 0 : i32
    %c0_i32_0 = arith.constant 0 : i32
    return %arg0, %arg1, %c0_i32 : i32, i32, i32
  }
}

</mosaic_0001>

<bundles_post_ra>
// kernel: tpu_custom_call.1
= control target key start
LH: loop header
LB: loop body
LE: loop exit
PB: predicated region body
PF: predicated region fallthrough
CT: control target
= control target key end

     0   :  { %s938_s0 = inlined_call_operand.hbm [shape: s32[2,8], index: 0, kind: input, shape index: {}]   ;;  %s939_s1 = inlined_call_operand.hbm [shape: f32[32,32], index: 1, kind: input, shape index: {}]   ;;  %s940_s2 = inlined_call_operand.hbm [shape: f32[8,32], index: 2, kind: input, shape index: {}]   ;;  %s941_s3 = inlined_call_operand.vmem [shape: f32[1,32], index: 3, kind: input, shape index: {}]   ;;  %s942_s4 = inlined_call_operand.vmem [shape: f32[1,32], index: 4, kind: input, shape index: {}]   ;;  %s943_s5 = inlined_call_operand.hbm [shape: f32[2,8,32], index: 5, kind: output, shape index: {}]  }
   0x1   :  { %949 = sst [smem:[#allocation18_spill]] %s940_s2  ;;  %s539_s20 = scalar_lea.hbm %s938_s0, 32 }
   0x2   :  { %p540_p0 = scmp.ne.s32.totalorder %s938_s0, %s539_s20  ;;  %p543_p1 = scmp.lt.u32.totalorder %s539_s20, %s938_s0 }
   0x4   :  { %p545_p2 = pnand %p543_p1, %p540_p0 }
   0x6   :  { %548 = shalt.err (!%p545_p2)  }
   0x7   :  { %s705_s25 = smov [#allocation5]  }
   0x8   :  { %11 = dma.hbm_to_smem %s938_s0, 32, %s705_s25, [#allocation4] }
   0x9   :  { %661 = dma.done.wait [#allocation4], 32 }
   0xa   :  { %662 = vsyncadd [#allocation4], 4294967264 }
   0xb   :  { %13 = sfence }
   0xc   :  { %14 = vsyncpa [#allocation7], 0 }
   0xd   :  { %15 = vsyncpa [#allocation8], 0 }
   0xe   :  { %17 = vsyncpa [#allocation8 + $0x1], 0  ;;  %s751_s28 = smov 0   ;;  %s753_s29 = smov 0  }
   0xf   :  { %s755_s30 = smov 0   ;;  %s757_s6 = smov 0  }
  0x10   :  { %s759_s7 = smov 0   ;;  %s761_s8 = smov 0  }
  0x11 LB: > { %s424_s0 = sadd.s32 4294967295, %s695_s8   ;;  %s425_s9 = sadd.s32 4294967294, %s695_s8   ;;  %s695_s8 = sphi %s761_s8, %s23_s8   ;;  %s691_s7 = sphi %s759_s7, %s967_s7   ;;  %s687_s6 = sphi %s757_s6, %s966_s6   ;;  %s683_s30 = sphi %s755_s30, %s965_s30   ;;  %s679_s29 = sphi %s753_s29, %s964_s29   ;;  %s675_s28 = sphi %s751_s28, %s963_s28  }
  0x12   : > { %s35_s10 = sadd.s32 1, %s691_s7  ;;  %s112_s11 = sadd.s32 1, %s683_s30 }
  0x13   : > { %p37_p3 = scmp.ge.s32.totalorder %s35_s10, 2  ;;  %p122_p4 = scmp.ne.s32.totalorder %s683_s30, %s679_s29 }
  0x14   : > { %p123_p5 = scmp.eq.s32.totalorder %s424_s0, 1  ;;  %p128_p6 = scmp.ne.s32.totalorder %s679_s29, %s675_s28 }
  0x15   : > { %s969_s10 = smov (%p37_p3, %s35_s10), 0  ;;  %p129_p8 = scmp.eq.s32.totalorder %s425_s9, 1 }
  0x16   : > { %p791_p7 = por %p123_p5, %p122_p4  ;;  %s107_s13 = ssub.s32 %s691_s7, %s969_s10 }
  0x17   : > { %p426_p9 = scmp.ge.s32.totalorder %s695_s8, 1  ;;  %p110_p10 = scmp.eq.s32.totalorder %s107_s13, 0 }
  0x18   : > { %s950_s12 = scalar_select %p791_p7, 1, 0 }
  0x19   : > { %p798_p11 = por %p129_p8, %p128_p6  ;;  %p136_p12 = scmp.lt.s32.totalorder %s695_s8, 3 }
  0x1a   : > { %s804_s15 = scalar_select %p110_p10, %s683_s30, %s112_s11  }
  0x1b   : > { %s951_s14 = scalar_select %p798_p11, 1, 0 }
  0x1c   : > { %p806_p13 = pnand %p426_p9, %p136_p12  ;;  %p810_p0 = scmp.eq.s32.totalorder %s424_s0, 0 }
  0x1d   : > { %s706_s18 = smov [#allocation6]   ;;  %s955_s2 = sld [smem:[#allocation18_spill]] }
  0x1e   : > { %s952_s16 = scalar_select %p806_p13, 1, 0 }
  0x1f   : > { %s953_s17 = scalar_select %p810_p0, 1, 0 }
  0x20   : > { %p460_p1 = pneg %p806_p13  ;;  %s151_s19 = sshll.u32 %s706_s18, 4  ;;  %s152_s19 = int_to_ptr.vmem [resolvable:$true] %s151_s19 }
  0x22   : > { %p818_p2 = pnand %p810_p0, %p460_p1 }
  0x23   : > { %s549_s23 = scalar_lea.hbm %s955_s2, 128 }
  0x24   : > { %p550_p3 = scmp.ne.s32.totalorder %s955_s2, %s549_s23  ;;  %p551_p4 = pneg %p818_p2 }
  0x25   : > { %p556_p8 = scmp.lt.u32.totalorder %s549_s23, %s955_s2 }
  0x26   : > { %p552_p5 = pnand %p551_p4, %p550_p3 }
  0x28   : > { %p553_p6 = pneg %p552_p5 }
  0x2a   : > { %p558_p9 = pnand %p556_p8, %p553_p6 }
  0x2c   : > { %561 = shalt.err (!%p558_p9)
}
  0x2d   : > { %s562_s0 = scalar_lea.vmem %s152_s19, 128  ;;  %p570_p11 = scmp.lt.s32.totalorder %s152_s19, %s152_s19 }
  0x2e   : > { %p563_p10 = scmp.ne.s32.totalorder %s152_s19, %s562_s0  ;;  %p571_p7 = scmp.lt.s32.totalorder %s562_s0, %s562_s0 }
  0x30   : > { %p565_p12 = pnand %p563_p10, %p551_p4  ;;  %p572_p0 = por %p571_p7, %p570_p11 }
  0x32   : > { %p566_p1 = pneg %p565_p12 }
  0x34   : > { %p573_p13 = pnand %p572_p0, %p566_p1 }
  0x36   : > { %576 = shalt.err (!%p573_p13)
}
  0x37   : > { %463 = dma.hbm_to_vmem [thread:$0]  (!%p818_p2), %s955_s2, 128, %s152_s19, [#allocation7]  }
  0x38   : > { %p956_p3 = scmp.ne.s32.totalorder %s952_s16, 0 }
  0x39   : > { %p957_p5 = scmp.ne.s32.totalorder (!%p956_p3), %s953_s17, 0 }
  0x3a   : > { %170 = sbr.rel (%p956_p3) target bundleno = 449 (0x1c1), region = 32 }
  0x41   : > { %664 = dma.done.wait (%p957_p5), [#allocation7], 128  }
  0x42   : > { %666 = vsyncadd (%p957_p5), [#allocation7], 4294967168  ;;  %s948_s13 = sand.u32 1, %s679_s29   ;;  %s850_s21 = smov 0  }
  0x43   : > { %s847_s18 = sshll.u32 %s948_s13, 3 }
  0x44 LB: >> { %s197_s16 = sshra.s32 %s699_s21, 7  ;;  %s202_s17 = sand.u32 127, %s699_s21  ;;  %s699_s21 = sphi %s850_s21, %s195_s21  }
  0x45   : >> { %s199_s19 = sadd.s32 %s687_s6, %s197_s16  ;;  %s211_s25 = scalar_lea.vmem [#allocation2], %s699_s21 }
  0x46   : >> { %s431_s22 = sshll.u32 %s199_s19, 7  ;;  %s220_s26 = sshll.u32 %s211_s25, 4  ;;  %s221_s26 = int_to_ptr.vmem [resolvable:$true] %s220_s26 }
  0x47   : >> { %s203_s23 = sadd.s32 %s431_s22, %s202_s17  ;;  %s212_s13 = scalar_lea.sflag [#allocation3], %s699_s21 }
  0x48   : >> { %s204_s24 = sld [smem:[#allocation5 + %s203_s23]]  ;;  %s579_s17 = scalar_lea.hbm %s939_s1, 512 }
  0x4e   : >> { %p205_p7 = scmp.gt.s32.totalorder %s204_s24, 0  ;;  %p432_p11 = scmp.lt.s32.totalorder %s204_s24, 31 }
  0x50   : >> { %s971_s24 = smov (!%p205_p7, %s204_s24), 0 }
  0x51   : >> { %s973_s24 = smov (!%p432_p11, %s971_s24), 31 }
  0x52   : >> { %s437_s27 = sshll.u32 %s973_s24, 4 }
  0x53   : >> { %s210_s11 = scalar_lea.hbm %s939_s1, %s437_s27 }
  0x54   : >> { %s577_s20 = scalar_lea.hbm %s210_s11, 16  ;;  %p580_p0 = scmp.lt.u32.totalorder %s210_s11, %s939_s1 }
  0x55   : >> { %p578_p13 = scmp.ne.s32.totalorder %s210_s11, %s577_s20  ;;  %p581_p2 = scmp.lt.u32.totalorder %s579_s17, %s577_s20 }
  0x56   : >> { %p583_p6 = scmp.lt.u32.totalorder %s577_s20, %s210_s11 }
  0x57   : >> { %p582_p4 = por %p581_p2, %p580_p0 }
  0x59   : >> { %p584_p8 = por %p583_p6, %p582_p4 }
  0x5b   : >> { %p585_p9 = pnand %p584_p8, %p578_p13 }
  0x5d   : >> { %588 = shalt.err (!%p585_p9)  }
  0x5e   : >> { %s589_s23 = scalar_lea.vmem %s221_s26, 16  ;;  %s707_s24 = smov [#allocation2]  }
  0x5f   : >> { %p590_p10 = scmp.ne.s32.totalorder %s221_s26, %s589_s23  ;;  %s591_s25 = sshll.u32 %s707_s24, 4  ;;  %s592_s25 = int_to_ptr.vmem [resolvable:$false] %s591_s25 }
  0x60   : >> { %s593_s27 = scalar_lea.vmem %s592_s25, 128  ;;  %p594_p12 = scmp.lt.s32.totalorder %s221_s26, %s592_s25 }
  0x61   : >> { %p595_p1 = scmp.lt.s32.totalorder %s593_s27, %s589_s23 }
  0x63   : >> { %p596_p3 = por %p595_p1, %p594_p12 }
  0x65   : >> { %p597_p5 = pnand %p596_p3, %p590_p10 }
  0x67   : >> { %600 = shalt.err (!%p597_p5)  }
  0x68   : >> { %223 = dma.hbm_to_vmem [thread:$0]  %s210_s11, 16, %s221_s26, %s212_s13 }
  0x69   : >> { %s195_s21 = sadd.s32 1, %s699_s21  }
  0x6a   : >> { %p192_p7 = scmp.ge.s32.totalorder %s195_s21, 8  }
  0x6b   : > { %s701_s2 = smov (%p192_p7), 0  }
  0x6c   : > { %194 = sbr.rel (!%p192_p7) target bundleno = 68 (0x44), region = 99 }
  0x73 LB: >> { %s230_s20 = scalar_lea.sflag [#allocation3], %s703_s2  ;;  %s703_s2 = sphi %s701_s2, %s229_s2  }
  0x74   : >> { %667 = dma.done.wait %s230_s20, 16 }
  0x75   : >> { %668 = vsyncadd %s230_s20, 4294967280  ;;  %s229_s2 = sadd.s32 1, %s703_s2  }
  0x76   : >> { %p226_p11 = scmp.ge.s32.totalorder %s229_s2, 8  }
  0x77   : > { %v234_v0 = vld [vmem:[#allocation2] sm:$0xff] (%p226_p11)  ;;  %v235_v1 = vld [vmem:[#allocation6] sm:$0xff] (%p226_p11)  ;;  %vm237_vm0 = vcmask (%p226_p11), 261120   ;;  %s441_s9 = sshll.u32 (%p226_p11), %s687_s6, 7  ;;  %s958_s11 = scalar_lea.vmem (%p226_p11), [#allocation9], %s847_s18 }
  0x78   : > { %228 = sbr.rel (!%p226_p11) target bundleno = 115 (0x73), region = 110  ;;  %v236_v2 = vadd.f32 (%p226_p11), %v235_v1, %v234_v0  ;;  %v438_v13 = vld [vmem:[%s941_s3] ss:$0 sm:$0xff] (%p226_p11)  ;;  %s284_s16 = sshll.u32 (%p226_p11), %s958_s11, 4  ;;  %s888_s16 = int_to_ptr.vmem [resolvable:$true] %s284_s16 }
  0x79   : > { %v439_v15 = vld [vmem:[%s942_s4] ss:$0 sm:$0xff] (%p226_p11)  ;;  %s886_s22 = scalar_lea.hbm (%p226_p11), %s943_s5, %s441_s9  ;;  %s959_s23 = smov (%p226_p11), %s958_s11 }
  0x7a   : > { %v238_v3 = vsel (%p226_p11), %vm237_vm0, %v236_v2, 0.0  ;;  %s960_s24 = sand.u32 (%p226_p11), 1, %s679_s29   ;;  %s601_s6 = scalar_lea.vmem (%p226_p11), %s888_s16, 128 }
  0x7b   : > { %239 = vadd.xlane.f32.xlu0 (%p226_p11), %v238_v3  ;;  %s270_s25 = scalar_lea.sflag (%p226_p11), [#allocation8], %s960_s24  ;;  %p602_p13 = scmp.ne.s32.totalorder (%p226_p11), %s888_s16, %s601_s6 }
  0x7c   : > { %p961_p0 = scmp.ne.s32.totalorder (%p226_p11), %s950_s12, 0  ;;  %s708_s27 = smov (%p226_p11), [#allocation9]  }
  0x7d   : > { %s605_s2 = sshll.u32 (%p226_p11), %s708_s27, 4  ;;  %s606_s2 = int_to_ptr.vmem [resolvable:$false] %s605_s2 }
  0x7e   : > { %p603_p2 = pnand (%p226_p11), %p602_p13, %p961_p0  ;;  %s607_s20 = scalar_lea.vmem (%p226_p11), %s606_s2, 256 }
  0x7f   : > { %p608_p6 = scmp.lt.s32.totalorder %s888_s16, %s606_s2  ;;  %p609_p8 = scmp.lt.s32.totalorder %s607_s20, %s601_s6 }
  0x80   : > { %p604_p4 = pneg %p603_p2 }
  0x81   : > { %p610_p9 = por %p609_p8, %p608_p6 }
  0x83   : > { %p611_p10 = pnand %p610_p9, %p604_p4 }
 0x108   : > { %v240_v4 = vpop.xlane.xlu0 %239 }
 0x109   : > { %v242_v5 = vmul.f32 0.03125, %v240_v4 }
 0x10b   : > { %v243_v6 = vsub.f32 %v236_v2, %v242_v5 }
 0x10d   : > { %v244_v7 = vmul.f32 %v243_v6, %v243_v6 }
 0x10f   : > { %v245_v8 = vsel %vm237_vm0, %v244_v7, 0.0 }
 0x110   : > { %246 = vadd.xlane.f32.xlu0 %v245_v8 }
 0x19d   : > { %v247_v9 = vpop.xlane.xlu0 %246 }
 0x19e   : > { %v248_v10 = vmul.f32 0.03125, %v247_v9 }
 0x1a0   : > { %v249_v11 = vadd.f32 1e-05, %v248_v10 }
 0x1a2   : > { %537 = vrsqrt.f32 %v249_v11 }
 0x1ac   : > { %v538_v12 = vpop.eup %537 }
 0x1ad   : > { %v251_v14 = vmul.f32 %v538_v12, %v243_v6 }
 0x1af   : > { %v259_v16 = vmul.f32 %v438_v13, %v251_v14 }
 0x1b1   : > { %v267_v17 = vadd.f32 %v439_v15, %v259_v16 }
 0x1b3   : > { %268 = vst.msk [vmem:[%s959_s23] sm:$0xff] %vm237_vm0, %v267_v17 }
 0x1b4   : > { %614 = shalt.err (!%p611_p10)
}
 0x1b5   : > { %s615_s18 = scalar_lea.hbm %s886_s22, 128  ;;  %s619_s26 = scalar_lea.hbm %s943_s5, 256 }
 0x1b6   : > { %p616_p12 = scmp.ne.s32.totalorder %s886_s22, %s615_s18  ;;  %p620_p5 = scmp.lt.u32.totalorder %s886_s22, %s943_s5 }
 0x1b7   : > { %p621_p7 = scmp.lt.u32.totalorder %s619_s26, %s615_s18  ;;  %p623_p13 = scmp.lt.u32.totalorder %s615_s18, %s886_s22 }
 0x1b8   : > { %p617_p1 = pnand %p616_p12, %p961_p0 }
 0x1b9   : > { %p622_p11 = por %p621_p7, %p620_p5 }
 0x1ba   : > { %p618_p3 = pneg %p617_p1 }
 0x1bb   : > { %p624_p2 = por %p623_p13, %p622_p11 }
 0x1bd   : > { %p625_p4 = pnand %p624_p2, %p618_p3 }
 0x1bf   : > { %628 = shalt.err (!%p625_p4)
}
 0x1c0   : > { %458 = dma.vmem_to_hbm [thread:$0]  (%p961_p0), %s888_s16, 128, %s886_s22, %s270_s25  }
 0x1c1 PF: > { %p470_p6 = scmp.ge.s32.totalorder %s695_s8, 2  ;;  %s296_s11 = sand.u32 1, %s675_s28  }
 0x1c2   : > { %p962_p8 = scmp.ne.s32.totalorder %s951_s14, 0  ;;  %s297_s17 = scalar_lea.sflag [#allocation8], %s296_s11 }
 0x1c4   : > { %p465_p9 = pnand %p470_p6, %p962_p8 }
 0x1c6   : > { %670 = dma.done.wait (!%p465_p9), %s297_s17, 128  }
 0x1c7   : > { %672 = vsyncadd (!%p465_p9), %s297_s17, 4294967168  ;;  %s23_s8 = sadd.s32 1, %s695_s8   ;;  %s963_s28 = smov %s679_s29 }
 0x1c8   : > { %p20_p10 = scmp.ge.s32.totalorder %s23_s8, 4   ;;  %s964_s29 = smov %s683_s30 }
 0x1c9   : > { %s965_s30 = smov %s804_s15  ;;  %s966_s6 = smov %s691_s7 }
 0x1ca   : > { %s967_s7 = smov %s969_s10  ;;  %22 = sbr.rel (!%p20_p10) target bundleno = 17 (0x11), region = 121 }
 0x1d1   :  { %302 = vsyncpa [#allocation7], 1 }
 0x1d2   :  { %304 = vsyncpa [#allocation7 + $0x1], 1 }
 0x1d3   :  { %305 = vsyncpa [#allocation8], 1 }
 0x1d4   :  { %307 = vsyncpa [#allocation8 + $0x1], 1 }
 0x1d5   :  { %308 = vsyncmov [#allocation3] }
 0x1d8   :  { %s309_s12 = vpop.sfrf %308 }
 0x1d9   :  { %p444_p0 = scmp.ne.s32.totalorder %s309_s12, 0 }
 0x1db   :  { %313 = shalt.err (%p444_p0)  }
 0x1dc   :  { %315 = vsyncmov [#allocation3 + $0x1] }
 0x1df   :  { %s316_s14 = vpop.sfrf %315 }
 0x1e0   :  { %p445_p12 = scmp.ne.s32.totalorder %s316_s14, 0 }
 0x1e2   :  { %320 = shalt.err (%p445_p12)  }
 0x1e3   :  { %322 = vsyncmov [#allocation3 + $0x2] }
 0x1e6   :  { %s323_s15 = vpop.sfrf %322 }
 0x1e7   :  { %p446_p1 = scmp.ne.s32.totalorder %s323_s15, 0 }
 0x1e9   :  { %327 = shalt.err (%p446_p1)  }
 0x1ea   :  { %329 = vsyncmov [#allocation3 + $0x3] }
 0x1ed   :  { %s330_s10 = vpop.sfrf %329 }
 0x1ee   :  { %p447_p3 = scmp.ne.s32.totalorder %s330_s10, 0 }
 0x1f0   :  { %334 = shalt.err (%p447_p3)  }
 0x1f1   :  { %336 = vsyncmov [#allocation3 + $0x4] }
 0x1f4   :  { %s337_s1 = vpop.sfrf %336 }
 0x1f5   :  { %p448_p5 = scmp.ne.s32.totalorder %s337_s1, 0 }
 0x1f7   :  { %341 = shalt.err (%p448_p5)  }
 0x1f8   :  { %343 = vsyncmov [#allocation3 + $0x5] }
 0x1fb   :  { %s344_s3 = vpop.sfrf %343 }
 0x1fc   :  { %p449_p7 = scmp.ne.s32.totalorder %s344_s3, 0 }
 0x1fe   :  { %348 = shalt.err (%p449_p7)  }
 0x1ff   :  { %350 = vsyncmov [#allocation3 + $0x6] }
 0x202   :  { %s351_s4 = vpop.sfrf %350 }
 0x203   :  { %p450_p11 = scmp.ne.s32.totalorder %s351_s4, 0 }
 0x205   :  { %355 = shalt.err (%p450_p11)  }
 0x206   :  { %357 = vsyncmov [#allocation3 + $0x7] }
 0x209   :  { %s358_s5 = vpop.sfrf %357 }
 0x20a   :  { %p451_p13 = scmp.ne.s32.totalorder %s358_s5, 0 }
 0x20c   :  { %362 = shalt.err (%p451_p13)  }

</bundles_post_ra>
